<compile_context>
chip_gen: v7x
topology: tpu7x:2x2x1
jax: 0.10.0
libtpu: 0.0.40
codegen_flags: <defaults>
</compile_context>

<pallas_src>
import jax
import jax.numpy as jnp
from jax.experimental import pallas as pl
from jax.experimental.pallas import tpu as pltpu

LN_EPS = 1e-5  # torch.nn.LayerNorm default


def _round_up(x, m):
    return ((x + m - 1) // m) * m


def _vmem_capacity_bytes():
    """Physical VMEM of the current chip; conservative fallback if unavailable."""
    try:
        return int(pltpu.get_tpu_info().vmem_capacity_bytes)
    except Exception:
        return 64 << 20  # v7x-sized: a safe lower bound on every generation


def _pick_tn(h_out_pad, h_in, w_itemsize, dbuf_budget):
    """Largest lane-aligned out-feature tile that divides h_out_pad, keeps the
    double-buffered weight tile inside dbuf_budget and (when possible) yields
    at least 2 grid steps so both v7x TensorCores get work."""
    single_tile = None
    for tn in (4096, 2048, 1024, 512, 256, 128):
        if h_out_pad % tn:
            continue
        if 2 * h_in * tn * w_itemsize > dbuf_budget:
            continue
        if h_out_pad // tn >= 2:
            return tn
        if single_tile is None:
            single_tile = tn
    if single_tile is not None:
        return single_tile      # e.g. h_out_pad == 128: cannot split further
    return h_out_pad            # tiny H (< 128): one full-width block


def _cross_pooler_kernel(x_ref, gamma_ref, beta_ref, w_ref, bias_ref, o_ref):
    # x_ref:     [B, H_in]   token-0 hidden states (resident across the grid)
    # gamma_ref: [1, H_in]   LayerNorm weight
    # beta_ref:  [1, H_in]   LayerNorm bias
    # w_ref:     [tn, H_in]  contiguous ROW tile of the native-layout Linear weight
    # bias_ref:  [1, tn]     Linear bias tile
    # o_ref:     [B, tn]     output tile
    x = x_ref[...].astype(jnp.float32)

    # LayerNorm over the hidden (last) dim, fp32 math (eps=1e-5).
    mean = jnp.mean(x, axis=-1, keepdims=True)
    centered = x - mean
    var = jnp.mean(centered * centered, axis=-1, keepdims=True)
    x_norm = centered * jax.lax.rsqrt(var + LN_EPS)
    x_norm = (x_norm * gamma_ref[...].astype(jnp.float32)
              + beta_ref[...].astype(jnp.float32))

    # y[b, n] = sum_h x_norm[b, h] * W[n, h] -- contract BOTH last dims so the
    # native [H_out, H_in] layout needs no transpose (MXU, fp32 accumulation).
    y = jax.lax.dot_general(
        x_norm.astype(w_ref.dtype), w_ref[...],
        dimension_numbers=(((1,), (1,)), ((), ())),
        preferred_element_type=jnp.float32)
    y = y + bias_ref[...].astype(jnp.float32)

    # QuickGELU: y * sigmoid(1.702 * y)  (EUP sigmoid, fp32).
    y = y * jax.nn.sigmoid(1.702 * y)

    o_ref[...] = y.astype(o_ref.dtype)


def init_cross_pooler_params(gamma, beta, w, bias, *, weight_dtype=jnp.bfloat16):
    """One-time parameter packing (call at parameter-load time, NOT per forward).

    * w keeps its native nn.Linear [out_features, in_features] layout (row
      tiles are single contiguous DMA slabs) and is downcast ONCE to
      `weight_dtype` (bf16 default; pass jnp.float32 for exact fp32 parity at
      2x the HBM cost).
    * out_features is zero-padded to a multiple of 128 so every streamed tile
      stays lane-aligned; padded columns are sliced off in cross_pooler.
    """
    h_out, h_in = w.shape
    h_out_pad = h_out if h_out < 128 else _round_up(h_out, 128)
    w_p = jnp.asarray(w, weight_dtype)
    b_p = jnp.asarray(bias, jnp.float32)
    if h_out_pad != h_out:
        w_p = jnp.pad(w_p, ((0, h_out_pad - h_out), (0, 0)))
        b_p = jnp.pad(b_p, (0, h_out_pad - h_out))
    return {
        "gamma": jnp.asarray(gamma, jnp.float32).reshape(1, h_in),
        "beta": jnp.asarray(beta, jnp.float32).reshape(1, h_in),
        "w": w_p,                        # [H_out_pad, H_in], native layout
        "bias": b_p.reshape(1, h_out_pad),
    }


def cross_pooler(hidden_states, hidden_mask, params):
    """hidden_states: [B, S, H]; hidden_mask unused (matches the PyTorch forward)."""
    del hidden_mask  # unused, as in the reference module
    B, S, H = hidden_states.shape
    gamma, beta, w, bias = params["gamma"], params["beta"], params["w"], params["bias"]
    h_out_pad, h_in = w.shape
    assert h_in == H, "weight in_features must match hidden size"

    # Only token 0 reaches the Linear; slice it here (tiny [B, H] op).
    x0 = hidden_states[:, 0, :]

    w_itemsize = jnp.dtype(w.dtype).itemsize
    out_dtype = hidden_states.dtype
    out_itemsize = jnp.dtype(out_dtype).itemsize

    vmem_cap = _vmem_capacity_bytes()
    dbuf_budget = (vmem_cap * 5) // 8            # ~40 MiB on v7x, ~80 MiB on v5e/v6e
    tn = _pick_tn(h_out_pad, h_in, w_itemsize, dbuf_budget)
    n_tiles = h_out_pad // tn

    est = (2 * h_in * tn * w_itemsize            # weight tiles, double-buffered
           + 2 * B * h_in * out_itemsize         # x0 (worst case: double-buffered)
           + 2 * B * tn * out_itemsize           # output tile, double-buffered
           + 4 * (2 * h_in + tn) * 4             # gamma / beta / bias
           + (4 << 20))                          # headroom for internal scratch
    vmem_limit = int(min(max(est, 16 << 20), vmem_cap - (8 << 20)))

    out = pl.pallas_call(
        _cross_pooler_kernel,
        out_shape=jax.ShapeDtypeStruct((B, h_out_pad), out_dtype),
        grid_spec=pltpu.PrefetchScalarGridSpec(
            num_scalar_prefetch=0,
            grid=(n_tiles,),
            in_specs=[
                pl.BlockSpec((B, h_in), lambda j: (0, 0)),     # x0 (resident)
                pl.BlockSpec((1, h_in), lambda j: (0, 0)),     # gamma
                pl.BlockSpec((1, h_in), lambda j: (0, 0)),     # beta
                pl.BlockSpec((tn, h_in), lambda j: (j, 0)),    # weight row tile (streamed)
                pl.BlockSpec((1, tn), lambda j: (0, j)),       # bias tile
            ],
            out_specs=pl.BlockSpec((B, tn), lambda j: (0, j)),
        ),
        compiler_params=pltpu.CompilerParams(
            dimension_semantics=("parallel",),   # v7x: split N tiles across TCs
            vmem_limit_bytes=vmem_limit),
    )(x0, gamma, beta, w, bias)

    if h_out_pad != H:
        out = out[:, :H]   # drop lane-padding columns
    return out


if __name__ == "__main__":
    B, S, H = 2, 8, 32
    key = jax.random.PRNGKey(0)
    k_x, k_w, k_b, k_g, k_be = jax.random.split(key, 5)

    hidden_states = jax.random.normal(k_x, (B, S, H), dtype=jnp.float32)
    hidden_mask = jnp.ones((B, S), dtype=jnp.float32)  # unused by forward

    # Deterministic synthetic parameters (shapes from CrossPooler.__init__).
    gamma = 1.0 + 0.1 * jax.random.normal(k_g, (H,), dtype=jnp.float32)
    beta = 0.1 * jax.random.normal(k_be, (H,), dtype=jnp.float32)
    w = jax.random.normal(k_w, (H, H), dtype=jnp.float32) * (1.0 / jnp.sqrt(H))
    bias = 0.05 * jax.random.normal(k_b, (H,), dtype=jnp.float32)

    # One-time packing (parameter-load time), then the hot-path call.
    params = init_cross_pooler_params(gamma, beta, w, bias)
    out = cross_pooler(hidden_states, hidden_mask, params)
    out = jax.block_until_ready(out)

    # Pure-JAX fp32 reference (PyTorch semantics).
    x0 = hidden_states[:, 0, :]
    mean = jnp.mean(x0, axis=-1, keepdims=True)
    var = jnp.mean((x0 - mean) ** 2, axis=-1, keepdims=True)
    xn = (x0 - mean) / jnp.sqrt(var + LN_EPS) * gamma + beta
    y = xn @ w.T + bias
    ref = y * jax.nn.sigmoid(1.702 * y)

    assert out.shape == (B, H)
    # Matmul operands are bf16 (weight-streaming roofline) -> loosened tolerance.
    assert jnp.allclose(out, ref, atol=3e-2, rtol=3e-2), "mismatch vs reference"
    print("KERNEL_OK")
</pallas_src>

<mosaic_0001>
module attributes {stable_mosaic.version = 11 : i64} {
  func.func @_cross_pooler_kernel(%arg0: i32, %arg1: memref<2x32xf32, #tpu.memory_space<vmem>>, %arg2: memref<1x32xf32, #tpu.memory_space<vmem>>, %arg3: memref<1x32xf32, #tpu.memory_space<vmem>>, %arg4: memref<32x32xbf16, #tpu.memory_space<vmem>>, %arg5: memref<1x32xf32, #tpu.memory_space<vmem>>, %arg6: memref<2x32xf32, #tpu.memory_space<vmem>>) attributes {dimension_semantics = [#tpu.dimension_semantics<parallel>], iteration_bounds = array<i64: 1>, scalar_prefetch = 0 : i64, scratch_operands = 0 : i64, tpu.core_type = #tpu.core_type<tc>, window_params = [{pipeline_mode = #tpu.pipeline_mode<synchronous>, transform_indices = @transform_0, window_bounds = array<i64: 2, 32>}, {pipeline_mode = #tpu.pipeline_mode<synchronous>, transform_indices = @transform_1, window_bounds = array<i64: 1, 32>}, {pipeline_mode = #tpu.pipeline_mode<synchronous>, transform_indices = @transform_2, window_bounds = array<i64: 1, 32>}, {transform_indices = @transform_3, window_bounds = array<i64: 32, 32>}, {transform_indices = @transform_4, window_bounds = array<i64: 1, 32>}, {transform_indices = @transform_5, window_bounds = array<i64: 2, 32>}]} {
    %c0 = arith.constant 0 : index
    %c0_0 = arith.constant 0 : index
    %0 = vector.load %arg1[%c0, %c0_0] : memref<2x32xf32, #tpu.memory_space<vmem>>, vector<2x32xf32>
    %cst = arith.constant dense<0.000000e+00> : vector<2xf32>
    %1 = vector.multi_reduction <add>, %0, %cst [1] : vector<2x32xf32> to vector<2xf32>
    %2 = vector.shape_cast %1 : vector<2xf32> to vector<2x1xf32>
    %cst_1 = arith.constant 3.200000e+01 : f32
    %3 = vector.broadcast %cst_1 : f32 to vector<2x1xf32>
    %4 = arith.divf %2, %3 : vector<2x1xf32>
    %5 = vector.broadcast %4 : vector<2x1xf32> to vector<2x32xf32>
    %6 = arith.subf %0, %5 : vector<2x32xf32>
    %7 = arith.mulf %6, %6 : vector<2x32xf32>
    %cst_2 = arith.constant dense<0.000000e+00> : vector<2xf32>
    %8 = vector.multi_reduction <add>, %7, %cst_2 [1] : vector<2x32xf32> to vector<2xf32>
    %9 = vector.shape_cast %8 : vector<2xf32> to vector<2x1xf32>
    %cst_3 = arith.constant 3.200000e+01 : f32
    %10 = vector.broadcast %cst_3 : f32 to vector<2x1xf32>
    %11 = arith.divf %9, %10 : vector<2x1xf32>
    %cst_4 = arith.constant 9.99999974E-6 : f32
    %12 = vector.broadcast %cst_4 : f32 to vector<2x1xf32>
    %13 = arith.addf %11, %12 : vector<2x1xf32>
    %14 = math.rsqrt %13 : vector<2x1xf32>
    %15 = vector.broadcast %14 : vector<2x1xf32> to vector<2x32xf32>
    %16 = arith.mulf %6, %15 : vector<2x32xf32>
    %c0_5 = arith.constant 0 : index
    %c0_6 = arith.constant 0 : index
    %17 = vector.load %arg2[%c0_5, %c0_6] : memref<1x32xf32, #tpu.memory_space<vmem>>, vector<1x32xf32>
    %18 = vector.broadcast %17 : vector<1x32xf32> to vector<2x32xf32>
    %19 = arith.mulf %16, %18 : vector<2x32xf32>
    %c0_7 = arith.constant 0 : index
    %c0_8 = arith.constant 0 : index
    %20 = vector.load %arg3[%c0_7, %c0_8] : memref<1x32xf32, #tpu.memory_space<vmem>>, vector<1x32xf32>
    %21 = vector.broadcast %20 : vector<1x32xf32> to vector<2x32xf32>
    %22 = arith.addf %19, %21 : vector<2x32xf32>
    %23 = arith.truncf %22 : vector<2x32xf32> to vector<2x32xbf16>
    %c0_9 = arith.constant 0 : index
    %c0_10 = arith.constant 0 : index
    %24 = vector.load %arg4[%c0_9, %c0_10] : memref<32x32xbf16, #tpu.memory_space<vmem>>, vector<32x32xbf16>
    %cst_11 = arith.constant dense<0.000000e+00> : vector<2x32xf32>
    %25 = tpu.matmul %23, %24, %cst_11 {dimension_numbers = #tpu.dot_dimension_numbers<[1], [1], [0], [0], [0, 0, 1, 0], [], []>} : vector<2x32xbf16>, vector<32x32xbf16>, vector<2x32xf32> -> vector<2x32xf32>
    %c0_12 = arith.constant 0 : index
    %c0_13 = arith.constant 0 : index
    %26 = vector.load %arg5[%c0_12, %c0_13] : memref<1x32xf32, #tpu.memory_space<vmem>>, vector<1x32xf32>
    %27 = vector.broadcast %26 : vector<1x32xf32> to vector<2x32xf32>
    %28 = arith.addf %25, %27 : vector<2x32xf32>
    %cst_14 = arith.constant 1.702000e+00 : f32
    %29 = vector.broadcast %cst_14 : f32 to vector<2x32xf32>
    %30 = arith.mulf %29, %28 : vector<2x32xf32>
    %31 = arith.negf %30 : vector<2x32xf32>
    %32 = math.exp %31 : vector<2x32xf32>
    %cst_15 = arith.constant 1.000000e+00 : f32
    %33 = vector.broadcast %cst_15 : f32 to vector<2x32xf32>
    %34 = arith.addf %33, %32 : vector<2x32xf32>
    %35 = arith.divf %33, %34 : vector<2x32xf32>
    %36 = arith.mulf %28, %35 : vector<2x32xf32>
    %c0_16 = arith.constant 0 : index
    %c0_17 = arith.constant 0 : index
    %37 = vector.load %arg6[%c0_16, %c0_17] : memref<2x32xf32, #tpu.memory_space<vmem>>, vector<2x32xf32>
    tpu.vector_store %arg6[%c0_16, %c0_17], %36 {strides = array<i32>} : memref<2x32xf32, #tpu.memory_space<vmem>>, vector<2x32xf32>,
    return
  }
  func.func @transform_0(%arg0: i32) -> (i32, i32) {
    %c0_i32 = arith.constant 0 : i32
    %c0_i32_0 = arith.constant 0 : i32
    %c0_i32_1 = arith.constant 0 : i32
    return %c0_i32, %c0_i32_0 : i32, i32
  }
  func.func @transform_1(%arg0: i32) -> (i32, i32) {
    %c0_i32 = arith.constant 0 : i32
    %c0_i32_0 = arith.constant 0 : i32
    %c0_i32_1 = arith.constant 0 : i32
    return %c0_i32, %c0_i32_0 : i32, i32
  }
  func.func @transform_2(%arg0: i32) -> (i32, i32) {
    %c0_i32 = arith.constant 0 : i32
    %c0_i32_0 = arith.constant 0 : i32
    %c0_i32_1 = arith.constant 0 : i32
    return %c0_i32, %c0_i32_0 : i32, i32
  }
  func.func @transform_3(%arg0: i32) -> (i32, i32) {
    %c0_i32 = arith.constant 0 : i32
    %c0_i32_0 = arith.constant 0 : i32
    return %arg0, %c0_i32 : i32, i32
  }
  func.func @transform_4(%arg0: i32) -> (i32, i32) {
    %c0_i32 = arith.constant 0 : i32
    %c0_i32_0 = arith.constant 0 : i32
    return %c0_i32, %arg0 : i32, i32
  }
  func.func @transform_5(%arg0: i32) -> (i32, i32) {
    %c0_i32 = arith.constant 0 : i32
    %c0_i32_0 = arith.constant 0 : i32
    return %c0_i32, %arg0 : i32, i32
  }
}

</mosaic_0001>

<bundles_post_ra>
// kernel: tpu_custom_call.1
= control target key start
LH: loop header
LB: loop body
LE: loop exit
PB: predicated region body
PF: predicated region fallthrough
CT: control target
= control target key end

     0   :  { %10 = vsyncpa [#allocation3], 0  ;;  %s377_s0 = inlined_call_operand.hbm [shape: f32[2,32], index: 0, kind: input, shape index: {}]   ;;  %s378_s1 = inlined_call_operand.vmem [shape: f32[1,32], index: 1, kind: input, shape index: {}]   ;;  %s379_s2 = inlined_call_operand.vmem [shape: f32[1,32], index: 2, kind: input, shape index: {}]   ;;  %s380_s3 = inlined_call_operand.hbm [shape: bf16[32,32], index: 3, kind: input, shape index: {}]   ;;  %s381_s4 = inlined_call_operand.vmem [shape: f32[1,32], index: 4, kind: input, shape index: {}]   ;;  %s382_s5 = inlined_call_operand.hbm [shape: f32[2,32], index: 5, kind: output, shape index: {}]  }
   0x1   :  { %11 = vsyncpa [#allocation6], 0 }
   0x2   :  { %12 = vsyncpa [#allocation4], 0  ;;  %s282_s18 = smov [#allocation2]   ;;  %s283_s20 = smov [#allocation5]  }
   0x3   :  { %s19_s19 = sshll.u32 %s282_s18, 4  ;;  %s32_s21 = sshll.u32 %s283_s20, 4  ;;  %s20_s19 = int_to_ptr.vmem [resolvable:$true] %s19_s19  ;;  %s319_s21 = int_to_ptr.vmem [resolvable:$true] %s32_s21 }
   0x4   :  { %s210_s24 = scalar_lea.hbm %s377_s0, 32 }
   0x5   :  { %p211_p0 = scmp.ne.s32.totalorder %s377_s0, %s210_s24  ;;  %p214_p1 = scmp.lt.u32.totalorder %s210_s24, %s377_s0 }
   0x7   :  { %p216_p2 = pnand %p214_p1, %p211_p0 }
   0x9   :  { %219 = shalt.err (!%p216_p2)
}
   0xa   :  { %s220_s29 = scalar_lea.vmem %s20_s19, 32  ;;  %p225_p4 = scmp.lt.s32.totalorder %s20_s19, %s20_s19 }
   0xb   :  { %p221_p3 = scmp.ne.s32.totalorder %s20_s19, %s220_s29  ;;  %p226_p5 = scmp.lt.s32.totalorder %s220_s29, %s220_s29 }
   0xd   :  { %p227_p6 = por %p226_p5, %p225_p4 }
   0xf   :  { %p228_p7 = pnand %p227_p6, %p221_p3 }
  0x11   :  { %231 = shalt.err (!%p228_p7)
}
  0x12   :  { %22 = dma.hbm_to_vmem [thread:$0]  %s377_s0, 32, %s20_s19, [#allocation3]  }
  0x13   :  { %s232_s9 = scalar_lea.hbm %s380_s3, 256 }
  0x14   :  { %p233_p8 = scmp.ne.s32.totalorder %s380_s3, %s232_s9  ;;  %p236_p9 = scmp.lt.u32.totalorder %s232_s9, %s380_s3 }
  0x16   :  { %p238_p10 = pnand %p236_p9, %p233_p8 }
  0x18   :  { %241 = shalt.err (!%p238_p10)
}
  0x19   :  { %s242_s14 = scalar_lea.vmem %s319_s21, 256  ;;  %p247_p12 = scmp.lt.s32.totalorder %s319_s21, %s319_s21 }
  0x1a   :  { %p243_p11 = scmp.ne.s32.totalorder %s319_s21, %s242_s14  ;;  %p248_p13 = scmp.lt.s32.totalorder %s242_s14, %s242_s14 }
  0x1c   :  { %p249_p0 = por %p248_p13, %p247_p12 }
  0x1e   :  { %p250_p1 = pnand %p249_p0, %p243_p11 }
  0x20   :  { %253 = shalt.err (!%p250_p1)
}
  0x21   :  { %s284_s0 = smov 64   ;;  %s285_s15 = smov 4  }
  0x22   :  { %38 = dma.hbm_to_vmem [thread:$0]  %s380_s3, 256, %s319_s21, [#allocation6], %s284_s0, %s284_s0, %s285_s15  }
  0x23   :  { %276 = dma.done.wait [#allocation3], 32  }
  0x24   :  { %277 = vsyncadd [#allocation3], 4294967264 }
  0x25   :  { %278 = dma.done.wait [#allocation6], 256  }
  0x26   :  { %279 = vsyncadd [#allocation6], 4294967040  ;;  %vm49_vm0 = vcmask 254976   ;;  %v48_v0 = vld [vmem:[#allocation2] sm:$0x3]  ;;  %v202_v7 = vld [vmem:[#allocation5] sm:$0xff]  }
  0x27   :  { %v50_v1 = vsel %vm49_vm0, %v48_v0, 0.0  ;;  %vm102_vm1 = vcmask 261120   ;;  %v286_v8 = vmov 0.0   ;;  %v203_v10 = vld [vmem:[#allocation5 + $0x8] sm:$0xff]   ;;  %vm287_vm2 = vmmov 0  }
  0x28   :  { %51 = vadd.xlane.f32.xlu0 %v50_v1  ;;  %187 = vmatprep.subr.bf16.mxu0 %v286_v8  ;;  %v107_v9 = vsel %vm102_vm1, %v202_v7, 0  ;;  %v110_v11 = vsel %vm102_vm1, %v203_v10, 0  ;;  %v177_v16 = vld [vmem:[%s378_s1] ss:$0 sm:$0xff]  ;;  %s288_s1 = smov [#allocation7]  }
  0x29   :  { %188 = vmatpush3.bf16.xpose.msra.mxu0 %v107_v9  ;;  %191 = vmatprep.mubr.msk.bf16.mxu0 %vm287_vm2, %v286_v8  ;;  %v178_v18 = vld [vmem:[%s379_s2] ss:$0 sm:$0xff]  ;;  %s167_s2 = sshll.u32 %s288_s1, 4  ;;  %s168_s2 = int_to_ptr.vmem [resolvable:$true] %s167_s2 }
  0x2a   :  { %189 = vmatprep.subr.bf16.mxu0 %v286_v8  ;;  %v179_v22 = vld [vmem:[%s381_s4] ss:$0 sm:$0xff]  ;;  %s254_s23 = scalar_lea.vmem %s168_s2, 32  ;;  %p259_p3 = scmp.lt.s32.totalorder %s168_s2, %s168_s2 }
  0x2b   :  { %p255_p2 = scmp.ne.s32.totalorder %s168_s2, %s254_s23  ;;  %p260_p4 = scmp.lt.s32.totalorder %s254_s23, %s254_s23 }
  0x2d   :  { %p261_p5 = por %p260_p4, %p259_p3 }
  0x2f   :  { %p262_p6 = pnand %p261_p5, %p255_p2 }
  0x31   :  { %190 = vmatpush3.bf16.xpose.msra.mxu0 %v110_v11 }
  0xb5   :  { %v52_v2 = vpop.xlane.xlu0 %51 }
  0xb6   :  { %v54_v3 = vmul.f32 0.03125, %v52_v2 }
  0xb8   :  { %v55_v4 = vsub.f32 %v48_v0, %v54_v3 }
  0xba   :  { %v56_v5 = vmul.f32 %v55_v4, %v55_v4 }
  0xbc   :  { %v57_v6 = vsel %vm49_vm0, %v56_v5, 0.0 }
  0xbd   :  { %58 = vadd.xlane.f32.xlu0 %v57_v6 }
 0x14a   :  { %v59_v12 = vpop.xlane.xlu0 %58 }
 0x14b   :  { %v60_v13 = vmul.f32 0.03125, %v59_v12 }
 0x14d   :  { %v61_v14 = vadd.f32 1e-05, %v60_v13 }
 0x14f   :  { %204 = vrsqrt.f32 %v61_v14 }
 0x159   :  { %v205_v15 = vpop.eup %204 }
 0x15a   :  { %v63_v17 = vmul.f32 %v205_v15, %v55_v4 }
 0x15c   :  { %v71_v19 = vmul.f32 %v177_v16, %v63_v17 }
 0x15e   :  { %v79_v20 = vadd.f32 %v178_v18, %v71_v19 }
 0x160   :  { %v80_v21 = vpack.c.bf16 %v79_v20, %v79_v20 }
 0x162   :  { %192 = vmatmul.mubr.msk.bf16.vlgmr.msra.gmra.mrb[0].mxu0 %vm102_vm1, %v80_v21 }
 0x235   :  { %v146_v23 = vpop.f32.mrb[0].mxu0 }
 0x236   :  { %v147_v24 = vadd.f32 %v179_v22, %v146_v23  ;;  %v193_v25 = vpop.f32.mrb[1].mxu0 }
 0x237   :  { %v149_v26 = vpop.f32.mrb[2].mxu0 }
 0x238   :  { %v183_v27 = vmul.f32 -1.702, %v147_v24  ;;  %v194_v28 = vpop.f32.mrb[3].mxu0 }
 0x23a   :  { %v154_v29 = vmul.f32 1.442695, %v183_v27 }
 0x23c   :  { %206 = vpow2.f32 %v154_v29 }
 0x246   :  { %v207_v30 = vpop.eup %206 }
 0x247   :  { %v156_v31 = vadd.f32 1.0, %v207_v30 }
 0x249   :  { %208 = vrcp.f32 %v156_v31 }
 0x253   :  { %v209_v32 = vpop.eup %208 }
 0x254   :  { %v159_v33 = vmul.f32 %v209_v32, %v147_v24 }
 0x256   :  { %160 = vst.msk [vmem:[#allocation7] sm:$0x3] %vm49_vm0, %v159_v33 }
 0x257   :  { %265 = shalt.err (!%p262_p6)
}
 0x258   :  { %s266_s25 = scalar_lea.hbm %s382_s5, 32 }
 0x259   :  { %p267_p7 = scmp.ne.s32.totalorder %s382_s5, %s266_s25  ;;  %p270_p8 = scmp.lt.u32.totalorder %s266_s25, %s382_s5 }
 0x25b   :  { %p272_p9 = pnand %p270_p8, %p267_p7 }
 0x25d   :  { %275 = shalt.err (!%p272_p9)
}
 0x25e   :  { %170 = dma.vmem_to_hbm [thread:$0]  %s168_s2, 32, %s382_s5, [#allocation4]  }
 0x25f   :  { %280 = dma.done.wait [#allocation4], 32  }
 0x260   :  { %281 = vsyncadd [#allocation4], 4294967264 }
 0x261   :  { %174 = vsyncpa [#allocation3], 1 }
 0x262   :  { %175 = vsyncpa [#allocation6], 1 }
 0x263   :  { %176 = vsyncpa [#allocation4], 1 }

</bundles_post_ra>
